<compile_context>
chip_gen: v7x
topology: tpu7x:2x2x1
jax: 0.10.0
libtpu: 0.0.40
codegen_flags: <defaults>
</compile_context>

<pallas_src>
import jax
import jax.numpy as jnp
from jax import lax
from jax.experimental import pallas as pl
from jax.experimental.pallas import tpu as pltpu

LN_EPS = 1e-5


def _patch_merge_kernel(x_ref, wt_ref, wb_ref, ws_ref, b_ref, o_ref):
    """Fused 2x2 merge + LayerNorm(4C) + Linear(4C -> D) for one row tile.

    x_ref : (TH, 2, Wh, 2C) row-pair tile of the (B, H, W, C) image where
            x_ref[t, 0, w', :] = [x(2h',   2w', :) | x(2h',   2w'+1, :)]  (= [x0|x2])
            x_ref[t, 1, w', :] = [x(2h'+1, 2w', :) | x(2h'+1, 2w'+1, :)]  (= [x1|x3])
    wt_ref: (2C, D) gamma-folded weight rows for [x0|x2]
    wb_ref: (2C, D) gamma-folded weight rows for [x1|x3]
    ws_ref: (1, D)  column-sum of the full gamma-folded weight
    b_ref : (1, D)  beta-folded Linear bias
    o_ref : (TH*Wh, D)
    """
    th, _, wh, c2 = x_ref.shape
    tm = th * wh
    c4 = 2 * c2

    xv = x_ref[...]                                     # (th, 2, wh, 2C)
    xe = xv[:, 0, :, :].reshape(tm, c2)                 # [x0 | x2]
    xo = xv[:, 1, :, :].reshape(tm, c2)                 # [x1 | x3]
    xe_f = xe.astype(jnp.float32)
    xo_f = xo.astype(jnp.float32)

    # Single-pass LayerNorm statistics over the full 4C channels
    # (biased variance, matching torch.nn.LayerNorm).
    s1 = (jnp.sum(xe_f, axis=-1, keepdims=True)
          + jnp.sum(xo_f, axis=-1, keepdims=True))
    s2 = (jnp.sum(xe_f * xe_f, axis=-1, keepdims=True)
          + jnp.sum(xo_f * xo_f, axis=-1, keepdims=True))
    mean = s1 * (1.0 / c4)
    var = s2 * (1.0 / c4) - mean * mean
    inv = lax.rsqrt(var + LN_EPS)                       # (tm, 1)

    # raw = x_merged @ W'   (split over the two contiguous halves; no concat)
    raw = jnp.dot(xe.astype(wt_ref.dtype), wt_ref[...],
                  preferred_element_type=jnp.float32)
    raw = raw + jnp.dot(xo.astype(wb_ref.dtype), wb_ref[...],
                        preferred_element_type=jnp.float32)

    # ((x - mean) * inv) @ W' + b'  ==  inv*raw - (inv*mean)*colsum(W') + b'
    y = (inv * raw
         - (inv * mean) * ws_ref[...].astype(jnp.float32)
         + b_ref[...].astype(jnp.float32))
    o_ref[...] = y.astype(o_ref.dtype)


def mamba_patch_merging(x, H, W, gamma, beta, w, b, *, tile_rows=1024):
    """x: (B, N, C) with N == H*W.  gamma/beta: (1, 4C).  w: (4C, D), b: (1, D).

    Returns ((B, N//4, D), (H//2, W//2)).
    """
    B, N, C = x.shape
    assert N == H * W and H % 2 == 0 and W % 2 == 0
    C4 = 4 * C
    D = w.shape[1]
    Hh, Wh = H // 2, W // 2
    Np = Hh * Wh
    M = B * Np

    # ---- parameter preprocessing (tiny, done once outside the kernel) -----
    # Fold LayerNorm affine into the Linear:
    #   (xn*gamma + beta) @ W + b  ==  xn @ (gamma[:,None]*W) + (beta @ W + b)
    # then split/permute the weight rows to the kernel's channel order:
    #   even image row -> [x0 | x2],   odd image row -> [x1 | x3].
    gamma_f = gamma.reshape(C4).astype(jnp.float32)
    beta_f = beta.reshape(C4).astype(jnp.float32)
    w_f = w.astype(jnp.float32)
    w_fold = gamma_f[:, None] * w_f                                # (4C, D)
    b_fold = beta_f[None, :] @ w_f + b.reshape(1, D).astype(jnp.float32)
    w_sum = jnp.sum(w_fold, axis=0, keepdims=True)                 # (1, D)
    idx_e = jnp.concatenate([jnp.arange(0, C), jnp.arange(2 * C, 3 * C)])
    idx_o = jnp.concatenate([jnp.arange(C, 2 * C), jnp.arange(3 * C, 4 * C)])
    w_top = w_fold[idx_e].astype(w.dtype)                          # (2C, D)
    w_bot = w_fold[idx_o].astype(w.dtype)                          # (2C, D)
    w_sum = w_sum.astype(jnp.float32)                              # (1, D)
    b_fold = b_fold.astype(jnp.float32)                            # (1, D)

    # ---- input layout: pure metadata reshape, no HBM copy -----------------
    # (B, H*W, C) -> (B*H/2, 2, W/2, 2C): consecutive image-row pairs; each
    # (w', 2C) slab holds the two horizontally adjacent pixels of one token.
    xr = x.reshape(B * Hh, 2, Wh, 2 * C)

    # ---- tiling ------------------------------------------------------------
    # One grid step handles `th` row pairs -> th*Wh merged tokens.  Ragged
    # last tile is handled by Pallas (cdiv grid + masked boundary block).
    th = max(1, min(B * Hh, pl.cdiv(tile_rows, Wh)))
    grid = (pl.cdiv(B * Hh, th),)
    tm = th * Wh

    out = pl.pallas_call(
        _patch_merge_kernel,
        out_shape=jax.ShapeDtypeStruct((M, D), x.dtype),
        grid_spec=pltpu.PrefetchScalarGridSpec(
            num_scalar_prefetch=0,
            grid=grid,
            in_specs=[
                pl.BlockSpec((th, 2, Wh, 2 * C), lambda i: (i, 0, 0, 0)),
                pl.BlockSpec((2 * C, D), lambda i: (0, 0)),   # grid-invariant W_top
                pl.BlockSpec((2 * C, D), lambda i: (0, 0)),   # grid-invariant W_bot
                pl.BlockSpec((1, D), lambda i: (0, 0)),       # grid-invariant colsum(W')
                pl.BlockSpec((1, D), lambda i: (0, 0)),       # grid-invariant b'
            ],
            out_specs=pl.BlockSpec((tm, D), lambda i: (i, 0)),
        ),
        compiler_params=pltpu.CompilerParams(
            dimension_semantics=("parallel",),
            vmem_limit_bytes=32 * 1024 * 1024),
    )(xr, w_top, w_bot, w_sum, b_fold)

    return out.reshape(B, Np, D), (Hh, Wh)


def _reference(x, H, W, gamma, beta, w, b):
    B, N, C = x.shape
    xg = x.reshape(B, H, W, C)
    x0 = xg[:, 0::2, 0::2, :]
    x1 = xg[:, 1::2, 0::2, :]
    x2 = xg[:, 0::2, 1::2, :]
    x3 = xg[:, 1::2, 1::2, :]
    xm = jnp.concatenate([x0, x1, x2, x3], axis=-1).reshape(B, -1, 4 * C)
    mean = jnp.mean(xm, axis=-1, keepdims=True)
    var = jnp.mean((xm - mean) ** 2, axis=-1, keepdims=True)
    xn = (xm - mean) * lax.rsqrt(var + LN_EPS) * gamma.reshape(-1) + beta.reshape(-1)
    return jnp.einsum("bnc,cd->bnd", xn, w) + b.reshape(-1)


if __name__ == "__main__":
    # Module config: input_dim=C=4, output_dim=D=8; spatial 16x16, batch 2.
    B, C, H, W = 2, 4, 16, 16
    D = 8
    N = H * W

    key = jax.random.PRNGKey(0)
    kx, kw, kb, kg, kbeta = jax.random.split(key, 5)

    x = jax.random.normal(kx, (B, N, C), dtype=jnp.float32)

    # Parameters (deterministic, synthetic).  Linear weight stored as (4C, D),
    # i.e. transpose of PyTorch's (D, 4C) layout.
    w = jax.random.normal(kw, (4 * C, D), dtype=jnp.float32) * 0.1
    b = jax.random.normal(kb, (1, D), dtype=jnp.float32) * 0.1
    gamma = 1.0 + 0.1 * jax.random.normal(kg, (1, 4 * C), dtype=jnp.float32)
    beta = 0.1 * jax.random.normal(kbeta, (1, 4 * C), dtype=jnp.float32)

    (out, (h2, w2)) = mamba_patch_merging(x, H, W, gamma, beta, w, b)
    out = jax.block_until_ready(out)

    ref = _reference(x, H, W, gamma, beta, w, b)
    assert out.shape == (B, N // 4, D)
    assert (h2, w2) == (H // 2, W // 2)
    assert jnp.allclose(out, ref, atol=1e-4, rtol=1e-4), "mismatch vs reference"

    print("KERNEL_OK")
</pallas_src>

<mosaic_0001>
module attributes {stable_mosaic.version = 11 : i64} {
  func.func @_patch_merge_kernel(%arg0: i32, %arg1: memref<16x2x8x8xf32, #tpu.memory_space<vmem>>, %arg2: memref<8x8xf32, #tpu.memory_space<vmem>>, %arg3: memref<8x8xf32, #tpu.memory_space<vmem>>, %arg4: memref<1x8xf32, #tpu.memory_space<vmem>>, %arg5: memref<1x8xf32, #tpu.memory_space<vmem>>, %arg6: memref<128x8xf32, #tpu.memory_space<vmem>>) attributes {dimension_semantics = [#tpu.dimension_semantics<parallel>], iteration_bounds = array<i64: 1>, scalar_prefetch = 0 : i64, scratch_operands = 0 : i64, tpu.core_type = #tpu.core_type<tc>, window_params = [{transform_indices = @transform_0, window_bounds = array<i64: 16, 2, 8, 8>}, {pipeline_mode = #tpu.pipeline_mode<synchronous>, transform_indices = @transform_1, window_bounds = array<i64: 8, 8>}, {pipeline_mode = #tpu.pipeline_mode<synchronous>, transform_indices = @transform_2, window_bounds = array<i64: 8, 8>}, {pipeline_mode = #tpu.pipeline_mode<synchronous>, transform_indices = @transform_3, window_bounds = array<i64: 1, 8>}, {pipeline_mode = #tpu.pipeline_mode<synchronous>, transform_indices = @transform_4, window_bounds = array<i64: 1, 8>}, {transform_indices = @transform_5, window_bounds = array<i64: 128, 8>}]} {
    %c0 = arith.constant 0 : index
    %c0_0 = arith.constant 0 : index
    %c0_1 = arith.constant 0 : index
    %c0_2 = arith.constant 0 : index
    %0 = vector.load %arg1[%c0, %c0_0, %c0_1, %c0_2] : memref<16x2x8x8xf32, #tpu.memory_space<vmem>>, vector<16x2x8x8xf32>
    %1 = vector.extract_strided_slice %0 {offsets = [0, 0, 0, 0], sizes = [16, 1, 8, 8], strides = [1, 1, 1, 1]} : vector<16x2x8x8xf32> to vector<16x1x8x8xf32>
    %2 = vector.shape_cast %1 : vector<16x1x8x8xf32> to vector<16x8x8xf32>
    %3 = vector.shape_cast %2 : vector<16x8x8xf32> to vector<128x8xf32>
    %4 = vector.extract_strided_slice %0 {offsets = [0, 1, 0, 0], sizes = [16, 1, 8, 8], strides = [1, 1, 1, 1]} : vector<16x2x8x8xf32> to vector<16x1x8x8xf32>
    %5 = vector.shape_cast %4 : vector<16x1x8x8xf32> to vector<16x8x8xf32>
    %6 = vector.shape_cast %5 : vector<16x8x8xf32> to vector<128x8xf32>
    %cst = arith.constant dense<0.000000e+00> : vector<128xf32>
    %7 = vector.multi_reduction <add>, %3, %cst [1] : vector<128x8xf32> to vector<128xf32>
    %8 = vector.shape_cast %7 : vector<128xf32> to vector<128x1xf32>
    %cst_3 = arith.constant dense<0.000000e+00> : vector<128xf32>
    %9 = vector.multi_reduction <add>, %6, %cst_3 [1] : vector<128x8xf32> to vector<128xf32>
    %10 = vector.shape_cast %9 : vector<128xf32> to vector<128x1xf32>
    %11 = arith.addf %8, %10 : vector<128x1xf32>
    %12 = arith.mulf %3, %3 : vector<128x8xf32>
    %cst_4 = arith.constant dense<0.000000e+00> : vector<128xf32>
    %13 = vector.multi_reduction <add>, %12, %cst_4 [1] : vector<128x8xf32> to vector<128xf32>
    %14 = vector.shape_cast %13 : vector<128xf32> to vector<128x1xf32>
    %15 = arith.mulf %6, %6 : vector<128x8xf32>
    %cst_5 = arith.constant dense<0.000000e+00> : vector<128xf32>
    %16 = vector.multi_reduction <add>, %15, %cst_5 [1] : vector<128x8xf32> to vector<128xf32>
    %17 = vector.shape_cast %16 : vector<128xf32> to vector<128x1xf32>
    %18 = arith.addf %14, %17 : vector<128x1xf32>
    %cst_6 = arith.constant 6.250000e-02 : f32
    %19 = vector.broadcast %cst_6 : f32 to vector<128x1xf32>
    %20 = arith.mulf %11, %19 : vector<128x1xf32>
    %cst_7 = arith.constant 6.250000e-02 : f32
    %21 = vector.broadcast %cst_7 : f32 to vector<128x1xf32>
    %22 = arith.mulf %18, %21 : vector<128x1xf32>
    %23 = arith.mulf %20, %20 : vector<128x1xf32>
    %24 = arith.subf %22, %23 : vector<128x1xf32>
    %cst_8 = arith.constant 9.99999974E-6 : f32
    %25 = vector.broadcast %cst_8 : f32 to vector<128x1xf32>
    %26 = arith.addf %24, %25 : vector<128x1xf32>
    %27 = math.rsqrt %26 : vector<128x1xf32>
    %c0_9 = arith.constant 0 : index
    %c0_10 = arith.constant 0 : index
    %28 = vector.load %arg2[%c0_9, %c0_10] : memref<8x8xf32, #tpu.memory_space<vmem>>, vector<8x8xf32>
    %cst_11 = arith.constant dense<0.000000e+00> : vector<128x8xf32>
    %29 = tpu.matmul %3, %28, %cst_11 {dimension_numbers = #tpu.dot_dimension_numbers<[1], [0], [0], [1], [0, 0, 1, 1], [], []>} : vector<128x8xf32>, vector<8x8xf32>, vector<128x8xf32> -> vector<128x8xf32>
    %c0_12 = arith.constant 0 : index
    %c0_13 = arith.constant 0 : index
    %30 = vector.load %arg3[%c0_12, %c0_13] : memref<8x8xf32, #tpu.memory_space<vmem>>, vector<8x8xf32>
    %cst_14 = arith.constant dense<0.000000e+00> : vector<128x8xf32>
    %31 = tpu.matmul %6, %30, %cst_14 {dimension_numbers = #tpu.dot_dimension_numbers<[1], [0], [0], [1], [0, 0, 1, 1], [], []>} : vector<128x8xf32>, vector<8x8xf32>, vector<128x8xf32> -> vector<128x8xf32>
    %32 = arith.addf %29, %31 : vector<128x8xf32>
    %33 = vector.broadcast %27 : vector<128x1xf32> to vector<128x8xf32>
    %34 = arith.mulf %33, %32 : vector<128x8xf32>
    %35 = arith.mulf %27, %20 : vector<128x1xf32>
    %c0_15 = arith.constant 0 : index
    %c0_16 = arith.constant 0 : index
    %36 = vector.load %arg4[%c0_15, %c0_16] : memref<1x8xf32, #tpu.memory_space<vmem>>, vector<1x8xf32>
    %37 = vector.broadcast %35 : vector<128x1xf32> to vector<128x8xf32>
    %38 = vector.broadcast %36 : vector<1x8xf32> to vector<128x8xf32>
    %39 = arith.mulf %37, %38 : vector<128x8xf32>
    %40 = arith.subf %34, %39 : vector<128x8xf32>
    %c0_17 = arith.constant 0 : index
    %c0_18 = arith.constant 0 : index
    %41 = vector.load %arg5[%c0_17, %c0_18] : memref<1x8xf32, #tpu.memory_space<vmem>>, vector<1x8xf32>
    %42 = vector.broadcast %41 : vector<1x8xf32> to vector<128x8xf32>
    %43 = arith.addf %40, %42 : vector<128x8xf32>
    %c0_19 = arith.constant 0 : index
    %c0_20 = arith.constant 0 : index
    %44 = vector.load %arg6[%c0_19, %c0_20] : memref<128x8xf32, #tpu.memory_space<vmem>>, vector<128x8xf32>
    tpu.vector_store %arg6[%c0_19, %c0_20], %43 {strides = array<i32>} : memref<128x8xf32, #tpu.memory_space<vmem>>, vector<128x8xf32>,
    return
  }
  func.func @transform_0(%arg0: i32) -> (i32, i32, i32, i32) {
    %c0_i32 = arith.constant 0 : i32
    %c0_i32_0 = arith.constant 0 : i32
    %c0_i32_1 = arith.constant 0 : i32
    %c0_i32_2 = arith.constant 0 : i32
    return %arg0, %c0_i32, %c0_i32_0, %c0_i32_1 : i32, i32, i32, i32
  }
  func.func @transform_1(%arg0: i32) -> (i32, i32) {
    %c0_i32 = arith.constant 0 : i32
    %c0_i32_0 = arith.constant 0 : i32
    %c0_i32_1 = arith.constant 0 : i32
    return %c0_i32, %c0_i32_0 : i32, i32
  }
  func.func @transform_2(%arg0: i32) -> (i32, i32) {
    %c0_i32 = arith.constant 0 : i32
    %c0_i32_0 = arith.constant 0 : i32
    %c0_i32_1 = arith.constant 0 : i32
    return %c0_i32, %c0_i32_0 : i32, i32
  }
  func.func @transform_3(%arg0: i32) -> (i32, i32) {
    %c0_i32 = arith.constant 0 : i32
    %c0_i32_0 = arith.constant 0 : i32
    %c0_i32_1 = arith.constant 0 : i32
    return %c0_i32, %c0_i32_0 : i32, i32
  }
  func.func @transform_4(%arg0: i32) -> (i32, i32) {
    %c0_i32 = arith.constant 0 : i32
    %c0_i32_0 = arith.constant 0 : i32
    %c0_i32_1 = arith.constant 0 : i32
    return %c0_i32, %c0_i32_0 : i32, i32
  }
  func.func @transform_5(%arg0: i32) -> (i32, i32) {
    %c0_i32 = arith.constant 0 : i32
    %c0_i32_0 = arith.constant 0 : i32
    return %arg0, %c0_i32 : i32, i32
  }
}

</mosaic_0001>

<bundles_post_ra>
// kernel: tpu_custom_call.1
= control target key start
LH: loop header
LB: loop body
LE: loop exit
PB: predicated region body
PF: predicated region fallthrough
CT: control target
= control target key end

     0   :  { %vm52_vm0 = vcmask 64512   ;;  %s1852_s0 = inlined_call_operand.vmem [shape: f32[16,2,8,8], index: 0, kind: input, shape index: {}]   ;;  %s1853_s2 = inlined_call_operand.vmem [shape: f32[8,8], index: 2, kind: input, shape index: {}]   ;;  %s1854_s1 = inlined_call_operand.vmem [shape: f32[8,8], index: 1, kind: input, shape index: {}]   ;;  %s1855_s3 = inlined_call_operand.vmem [shape: f32[1,8], index: 3, kind: input, shape index: {}]   ;;  %s1856_s4 = inlined_call_operand.vmem [shape: f32[1,8], index: 4, kind: input, shape index: {}]   ;;  %s1857_s5 = inlined_call_operand.vmem [shape: f32[128,8], index: 5, kind: output, shape index: {}]  }
   0x1   :  { %v1108_v0 = vld [vmem:[%s1852_s0 + $0x20] sm:$0xff]  ;;  %v1118_v2 = vld [vmem:[%s1852_s0 + $0x30] sm:$0xff]  ;;  %v1148_v10 = vld [vmem:[%s1852_s0 + $0x8] sm:$0xff] }
   0x2   :  { %v1113_v1 = vld [vmem:[%s1852_s0] sm:$0xff]  ;;  %v59_v3 = vsel %vm52_vm0, %v1108_v0, 0.0  ;;  %v1127_v5 = vld [vmem:[%s1852_s0 + $0x10] sm:$0xff]  ;;  %v62_v6 = vsel %vm52_vm0, %v1118_v2, 0.0  ;;  %977 = vmatprep.mubr.msk.f32.mxu1 %vm52_vm0, %v1148_v10  ;;  %v1175_v17 = vld [vmem:[%s1852_s0 + $0x18] sm:$0xff]  ;;  %v101_v48 = vsel %vm52_vm0, %v1148_v10, 0.0 }
   0x3   :  { %v53_v4 = vsel %vm52_vm0, %v1113_v1, 0.0  ;;  %1003 = vmatprep.mubr.msk.f32.mxu0 %vm52_vm0, %v1113_v1  ;;  %60 = vadd.xlane.f32.xlu1 %v59_v3  ;;  %v56_v7 = vsel %vm52_vm0, %v1127_v5, 0.0  ;;  %v1138_v8 = vld [vmem:[%s1852_s0 + $0x50] sm:$0xff]  ;;  %v1143_v9 = vld [vmem:[%s1852_s0 + $0x40] sm:$0xff]  ;;  %v1182_v18 = vld [vmem:[%s1852_s0 + $0x28] sm:$0xff]  ;;  %v104_v47 = vsel %vm52_vm0, %v1175_v17, 0.0 }
   0x4   :  { %54 = vadd.xlane.f32.xlu0 %v53_v4  ;;  %v406_v11 = vld [vmem:[%s1853_s2] sm:$0xff]  ;;  %v68_v12 = vsel %vm52_vm0, %v1138_v8, 0.0  ;;  %v65_v13 = vsel %vm52_vm0, %v1143_v9, 0.0  ;;  %v1165_v15 = vld [vmem:[%s1852_s0 + $0x70] sm:$0xff]  ;;  %v1205_v23 = vld [vmem:[%s1852_s0 + $0x38] sm:$0xff]  ;;  %v107_v52 = vsel %vm52_vm0, %v1182_v18, 0.0 }
   0x5   :  { %975 = vmatprep.subr.mxu1 %v406_v11  ;;  %v405_v14 = vld [vmem:[%s1854_s1] sm:$0xff]  ;;  %v74_v19 = vsel %vm52_vm0, %v1165_v15, 0.0  ;;  %v1195_v21 = vld [vmem:[%s1852_s0 + $0x90] sm:$0xff]  ;;  %v1214_v24 = vld [vmem:[%s1852_s0 + $0x48] sm:$0xff]  ;;  %v110_v51 = vsel %vm52_vm0, %v1205_v23, 0.0 }
   0x6   :  { %v1170_v16 = vld [vmem:[%s1852_s0 + $0x60] sm:$0xff]  ;;  %1001 = vmatprep.subr.mxu0 %v405_v14  ;;  %976 = vmatpush3.msra.mxu1 %v406_v11  ;;  %v80_v25 = vsel %vm52_vm0, %v1195_v21, 0.0  ;;  %v1227_v27 = vld [vmem:[%s1852_s0 + $0xb0] sm:$0xff]  ;;  %v1237_v29 = vld [vmem:[%s1852_s0 + $0x58] sm:$0xff]  ;;  %v113_v55 = vsel %vm52_vm0, %v1214_v24, 0.0 }
   0x7   :  { %63 = vadd.xlane.f32.xlu1 %v62_v6  ;;  %1002 = vmatpush3.msra.mxu0 %v405_v14  ;;  %v71_v20 = vsel %vm52_vm0, %v1170_v16, 0.0  ;;  %v1200_v22 = vld [vmem:[%s1852_s0 + $0x80] sm:$0xff]  ;;  %v1246_v30 = vld [vmem:[%s1852_s0 + $0x68] sm:$0xff]  ;;  %v86_v31 = vsel %vm52_vm0, %v1227_v27, 0.0  ;;  %v1259_v33 = vld [vmem:[%s1852_s0 + $0xd0] sm:$0xff]  ;;  %v116_v54 = vsel %vm52_vm0, %v1237_v29, 0.0  ;;  %v166_v6 = vmul.f32 %v1127_v5, %v1127_v5 }
   0x8   :  { %57 = vadd.xlane.f32.xlu0 %v56_v7  ;;  %978 = vmatmul.mubr.msk.f32.vlgmr.msra.gmra.mrb[0].mxu1 %vm52_vm0, %v1175_v17  ;;  %v77_v26 = vsel %vm52_vm0, %v1200_v22, 0.0  ;;  %v1232_v28 = vld [vmem:[%s1852_s0 + $0xa0] sm:$0xff]  ;;  %v1269_v35 = vld [vmem:[%s1852_s0 + $0x78] sm:$0xff]  ;;  %v1278_v36 = vld [vmem:[%s1852_s0 + $0x88] sm:$0xff]  ;;  %v92_v37 = vsel %vm52_vm0, %v1259_v33, 0.0  ;;  %v119_v57 = vsel %vm52_vm0, %v1246_v30, 0.0  ;;  %v165_v7 = vmul.f32 %v1113_v1, %v1113_v1 }
   0x9   :  { %1004 = vmatmul.mubr.msk.f32.vlgmr.msra.gmra.mrb[0].mxu0 %vm52_vm0, %v1127_v5  ;;  %980 = vmatprep.mubr.msk.f32.mxu1 %vm52_vm0, %v1182_v18  ;;  %v83_v32 = vsel %vm52_vm0, %v1232_v28, 0.0  ;;  %v1264_v34 = vld [vmem:[%s1852_s0 + $0xc0] sm:$0xff]  ;;  %v1291_v39 = vld [vmem:[%s1852_s0 + $0xf0] sm:$0xff]  ;;  %v1301_v41 = vld [vmem:[%s1852_s0 + $0x98] sm:$0xff]  ;;  %v122_v56 = vsel %vm52_vm0, %v1269_v35, 0.0  ;;  %v125_v59 = vsel %vm52_vm0, %v1278_v36, 0.0  ;;  %v167_v14 = vmul.f32 %v1108_v0, %v1108_v0 }
   0xa   :  { %1006 = vmatprep.mubr.msk.f32.mxu0 %vm52_vm0, %v1108_v0  ;;  %v89_v38 = vsel %vm52_vm0, %v1264_v34, 0.0  ;;  %v1296_v40 = vld [vmem:[%s1852_s0 + $0xe0] sm:$0xff]  ;;  %v1310_v42 = vld [vmem:[%s1852_s0 + $0xa8] sm:$0xff]  ;;  %v98_v43 = vsel %vm52_vm0, %v1291_v39, 0.0  ;;  %v1323_v45 = vld [vmem:[%s1852_s0 + $0xb8] sm:$0xff]  ;;  %v128_v58 = vsel %vm52_vm0, %v1301_v41, 0.0  ;;  %v170_v1 = vmul.f32 %v1138_v8, %v1138_v8 }
   0xb   :  { %69 = vadd.xlane.f32.xlu1 %v68_v12  ;;  %v95_v44 = vsel %vm52_vm0, %v1296_v40, 0.0  ;;  %v1332_v46 = vld [vmem:[%s1852_s0 + $0xc8] sm:$0xff]  ;;  %v1345_v49 = vld [vmem:[%s1852_s0 + $0xd8] sm:$0xff]  ;;  %v134_v60 = vsel %vm52_vm0, %v1323_v45, 0.0  ;;  %v131_v61 = vsel %vm52_vm0, %v1310_v42, 0.0  ;;  %v184_v11 = vsel %vm52_vm0, %v166_v6, 0.0 }
   0xc   :  { %66 = vadd.xlane.f32.xlu0 %v65_v13  ;;  %981 = vmatmul.mubr.msk.f32.gmra.mrb[2].mxu1 %vm52_vm0, %v1205_v23  ;;  %v1354_v50 = vld [vmem:[%s1852_s0 + $0xe8] sm:$0xff]  ;;  %v1367_v53 = vld [vmem:[%s1852_s0 + $0xf8] sm:$0xff]  ;;  %v140_v62 = vsel %vm52_vm0, %v1345_v49, 0.0  ;;  %v137_v63 = vsel %vm52_vm0, %v1332_v46, 0.0  ;;  %v181_v12 = vsel %vm52_vm0, %v165_v7, 0.0  ;;  %v168_v13 = vmul.f32 %v1118_v2, %v1118_v2 }
   0xd   :  { %1007 = vmatmul.mubr.msk.f32.gmra.mrb[2].mxu0 %vm52_vm0, %v1118_v2  ;;  %983 = vmatprep.mubr.msk.f32.mxu1 %vm52_vm0, %v1214_v24  ;;  %v146_v3 = vsel %vm52_vm0, %v1367_v53, 0.0  ;;  %v143_v4 = vsel %vm52_vm0, %v1354_v50, 0.0  ;;  %v187_v5 = vsel %vm52_vm0, %v167_v14, 0.0  ;;  %v172_v0 = vmul.f32 %v1165_v15, %v1165_v15 }
   0xe   :  { %1009 = vmatprep.mubr.msk.f32.mxu0 %vm52_vm0, %v1143_v9  ;;  %v243_v7 = vmul.f32 %v1354_v50, %v1354_v50 }
   0xf   :  { %75 = vadd.xlane.f32.xlu1 %v74_v19  ;;  %v190_v19 = vsel %vm52_vm0, %v168_v13, 0.0 }
  0x10   :  { %72 = vadd.xlane.f32.xlu0 %v71_v20  ;;  %984 = vmatmul.mubr.msk.f32.gmra.mrb[4].mxu1 %vm52_vm0, %v1237_v29  ;;  %v169_v20 = vmul.f32 %v1143_v9, %v1143_v9  ;;  %v174_v9 = vmul.f32 %v1195_v21, %v1195_v21 }
  0x11   :  { %1010 = vmatmul.mubr.msk.f32.gmra.mrb[4].mxu0 %vm52_vm0, %v1138_v8  ;;  %986 = vmatprep.mubr.msk.f32.mxu1 %vm52_vm0, %v1246_v30 }
  0x12   :  { %1012 = vmatprep.mubr.msk.f32.mxu0 %vm52_vm0, %v1170_v16  ;;  %v193_v2 = vsel %vm52_vm0, %v169_v20, 0.0 }
  0x13   :  { %81 = vadd.xlane.f32.xlu1 %v80_v25  ;;  %v196_v25 = vsel %vm52_vm0, %v170_v1, 0.0 }
  0x14   :  { %78 = vadd.xlane.f32.xlu0 %v77_v26  ;;  %987 = vmatmul.mubr.msk.f32.gmra.mrb[6].mxu1 %vm52_vm0, %v1269_v35  ;;  %v171_v26 = vmul.f32 %v1170_v16, %v1170_v16  ;;  %v176_v16 = vmul.f32 %v1227_v27, %v1227_v27 }
  0x15   :  { %1013 = vmatmul.mubr.msk.f32.gmra.mrb[6].mxu0 %vm52_vm0, %v1165_v15  ;;  %989 = vmatprep.mubr.msk.f32.mxu1 %vm52_vm0, %v1278_v36 }
  0x16   :  { %1015 = vmatprep.mubr.msk.f32.mxu0 %vm52_vm0, %v1200_v22  ;;  %v199_v8 = vsel %vm52_vm0, %v171_v26, 0.0 }
  0x17   :  { %87 = vadd.xlane.f32.xlu1 %v86_v31  ;;  %v202_v31 = vsel %vm52_vm0, %v172_v0, 0.0 }
  0x18   :  { %84 = vadd.xlane.f32.xlu0 %v83_v32  ;;  %990 = vmatmul.mubr.msk.f32.gmra.mrb[8].mxu1 %vm52_vm0, %v1301_v41  ;;  %v173_v32 = vmul.f32 %v1200_v22, %v1200_v22  ;;  %v178_v22 = vmul.f32 %v1259_v33, %v1259_v33 }
  0x19   :  { %1016 = vmatmul.mubr.msk.f32.gmra.mrb[8].mxu0 %vm52_vm0, %v1195_v21  ;;  %992 = vmatprep.mubr.msk.f32.mxu1 %vm52_vm0, %v1310_v42 }
  0x1a   :  { %1018 = vmatprep.mubr.msk.f32.mxu0 %vm52_vm0, %v1232_v28  ;;  %v205_v15 = vsel %vm52_vm0, %v173_v32, 0.0 }
  0x1b   :  { %93 = vadd.xlane.f32.xlu1 %v92_v37  ;;  %v208_v37 = vsel %vm52_vm0, %v174_v9, 0.0 }
  0x1c   :  { %90 = vadd.xlane.f32.xlu0 %v89_v38  ;;  %993 = vmatmul.mubr.msk.f32.gmra.mrb[10].mxu1 %vm52_vm0, %v1323_v45  ;;  %v175_v38 = vmul.f32 %v1232_v28, %v1232_v28  ;;  %v180_v28 = vmul.f32 %v1291_v39, %v1291_v39 }
  0x1d   :  { %1019 = vmatmul.mubr.msk.f32.gmra.mrb[10].mxu0 %vm52_vm0, %v1227_v27  ;;  %995 = vmatprep.mubr.msk.f32.mxu1 %vm52_vm0, %v1332_v46 }
  0x1e   :  { %1021 = vmatprep.mubr.msk.f32.mxu0 %vm52_vm0, %v1264_v34  ;;  %v211_v21 = vsel %vm52_vm0, %v175_v38, 0.0 }
  0x1f   :  { %99 = vadd.xlane.f32.xlu1 %v98_v43  ;;  %v214_v43 = vsel %vm52_vm0, %v176_v16, 0.0 }
  0x20   :  { %96 = vadd.xlane.f32.xlu0 %v95_v44  ;;  %996 = vmatmul.mubr.msk.f32.gmra.mrb[12].mxu1 %vm52_vm0, %v1345_v49  ;;  %v177_v44 = vmul.f32 %v1264_v34, %v1264_v34  ;;  %v230_v34 = vmul.f32 %v1175_v17, %v1175_v17 }
  0x21   :  { %1022 = vmatmul.mubr.msk.f32.gmra.mrb[12].mxu0 %vm52_vm0, %v1259_v33  ;;  %998 = vmatprep.mubr.msk.f32.mxu1 %vm52_vm0, %v1354_v50 }
  0x22   :  { %1024 = vmatprep.mubr.msk.f32.mxu0 %vm52_vm0, %v1296_v40  ;;  %v217_v27 = vsel %vm52_vm0, %v177_v44, 0.0 }
  0x23   :  { %105 = vadd.xlane.f32.xlu1 %v104_v47  ;;  %v220_v47 = vsel %vm52_vm0, %v178_v22, 0.0 }
  0x24   :  { %102 = vadd.xlane.f32.xlu0 %v101_v48  ;;  %999 = vmatmul.mubr.msk.f32.gmra.mrb[14].mxu1 %vm52_vm0, %v1367_v53  ;;  %v179_v48 = vmul.f32 %v1296_v40, %v1296_v40  ;;  %v232_v40 = vmul.f32 %v1205_v23, %v1205_v23 }
  0x25   :  { %1025 = vmatmul.mubr.msk.f32.gmra.mrb[14].mxu0 %vm52_vm0, %v1291_v39 }
  0x26   :  { %v223_v33 = vsel %vm52_vm0, %v179_v48, 0.0 }
  0x27   :  { %111 = vadd.xlane.f32.xlu1 %v110_v51  ;;  %v226_v51 = vsel %vm52_vm0, %v180_v28, 0.0 }
  0x28   :  { %108 = vadd.xlane.f32.xlu0 %v107_v52  ;;  %v229_v52 = vmul.f32 %v1148_v10, %v1148_v10  ;;  %v234_v10 = vmul.f32 %v1237_v29, %v1237_v29 }
  0x2a   :  { %v245_v39 = vsel %vm52_vm0, %v229_v52, 0.0 }
  0x2b   :  { %117 = vadd.xlane.f32.xlu1 %v116_v54  ;;  %v248_v54 = vsel %vm52_vm0, %v230_v34, 0.0 }
  0x2c   :  { %114 = vadd.xlane.f32.xlu0 %v113_v55  ;;  %v231_v55 = vmul.f32 %v1182_v18, %v1182_v18  ;;  %v236_v18 = vmul.f32 %v1269_v35, %v1269_v35 }
  0x2e   :  { %v251_v17 = vsel %vm52_vm0, %v231_v55, 0.0 }
  0x2f   :  { %123 = vadd.xlane.f32.xlu1 %v122_v56  ;;  %v254_v56 = vsel %vm52_vm0, %v232_v40, 0.0 }
  0x30   :  { %120 = vadd.xlane.f32.xlu0 %v119_v57  ;;  %v233_v57 = vmul.f32 %v1214_v24, %v1214_v24  ;;  %v238_v24 = vmul.f32 %v1301_v41, %v1301_v41 }
  0x32   :  { %v257_v23 = vsel %vm52_vm0, %v233_v57, 0.0 }
  0x33   :  { %129 = vadd.xlane.f32.xlu1 %v128_v58  ;;  %v260_v58 = vsel %vm52_vm0, %v234_v10, 0.0 }
  0x34   :  { %126 = vadd.xlane.f32.xlu0 %v125_v59  ;;  %v235_v59 = vmul.f32 %v1246_v30, %v1246_v30  ;;  %v240_v30 = vmul.f32 %v1323_v45, %v1323_v45 }
  0x36   :  { %v263_v29 = vsel %vm52_vm0, %v235_v59, 0.0 }
  0x37   :  { %135 = vadd.xlane.f32.xlu1 %v134_v60  ;;  %v266_v60 = vsel %vm52_vm0, %v236_v18, 0.0 }
  0x38   :  { %132 = vadd.xlane.f32.xlu0 %v131_v61  ;;  %v237_v61 = vmul.f32 %v1278_v36, %v1278_v36  ;;  %v242_v36 = vmul.f32 %v1345_v49, %v1345_v49  ;;  %v287_v49 = vsel %vm52_vm0, %v243_v7, 0.0 }
  0x3a   :  { %v269_v35 = vsel %vm52_vm0, %v237_v61, 0.0  ;;  %v284_v6 = vsel %vm52_vm0, %v242_v36, 0.0 }
  0x3b   :  { %141 = vadd.xlane.f32.xlu1 %v140_v62  ;;  %v272_v62 = vsel %vm52_vm0, %v238_v24, 0.0 }
  0x3c   :  { %138 = vadd.xlane.f32.xlu0 %v137_v63  ;;  %v239_v63 = vmul.f32 %v1310_v42, %v1310_v42  ;;  %v244_v42 = vmul.f32 %v1367_v53, %v1367_v53 }
  0x3e   :  { %v275_v41 = vsel %vm52_vm0, %v239_v63, 0.0 }
  0x3f   :  { %147 = vadd.xlane.f32.xlu1 %v146_v3  ;;  %v278_v3 = vsel %vm52_vm0, %v240_v30, 0.0 }
  0x40   :  { %144 = vadd.xlane.f32.xlu0 %v143_v4  ;;  %v241_v4 = vmul.f32 %v1332_v46, %v1332_v46 }
  0x42   :  { %v281_v45 = vsel %vm52_vm0, %v241_v4, 0.0 }
  0x43   :  { %185 = vadd.xlane.f32.xlu1 %v184_v11  ;;  %v290_v11 = vsel %vm52_vm0, %v244_v42, 0.0 }
  0x44   :  { %182 = vadd.xlane.f32.xlu0 %v181_v12 }
  0x47   :  { %191 = vadd.xlane.f32.xlu1 %v190_v19 }
  0x48   :  { %188 = vadd.xlane.f32.xlu0 %v187_v5 }
  0x4b   :  { %197 = vadd.xlane.f32.xlu1 %v196_v25 }
  0x4c   :  { %194 = vadd.xlane.f32.xlu0 %v193_v2 }
  0x4f   :  { %203 = vadd.xlane.f32.xlu1 %v202_v31 }
  0x50   :  { %200 = vadd.xlane.f32.xlu0 %v199_v8 }
  0x53   :  { %209 = vadd.xlane.f32.xlu1 %v208_v37 }
  0x54   :  { %206 = vadd.xlane.f32.xlu0 %v205_v15 }
  0x57   :  { %215 = vadd.xlane.f32.xlu1 %v214_v43 }
  0x58   :  { %212 = vadd.xlane.f32.xlu0 %v211_v21 }
  0x5b   :  { %221 = vadd.xlane.f32.xlu1 %v220_v47 }
  0x5c   :  { %218 = vadd.xlane.f32.xlu0 %v217_v27 }
  0x5f   :  { %227 = vadd.xlane.f32.xlu1 %v226_v51 }
  0x60   :  { %224 = vadd.xlane.f32.xlu0 %v223_v33 }
  0x63   :  { %249 = vadd.xlane.f32.xlu1 %v248_v54 }
  0x64   :  { %246 = vadd.xlane.f32.xlu0 %v245_v39 }
  0x67   :  { %255 = vadd.xlane.f32.xlu1 %v254_v56 }
  0x68   :  { %252 = vadd.xlane.f32.xlu0 %v251_v17 }
  0x6b   :  { %261 = vadd.xlane.f32.xlu1 %v260_v58 }
  0x6c   :  { %258 = vadd.xlane.f32.xlu0 %v257_v23 }
  0x6f   :  { %267 = vadd.xlane.f32.xlu1 %v266_v60 }
  0x70   :  { %264 = vadd.xlane.f32.xlu0 %v263_v29 }
  0x73   :  { %273 = vadd.xlane.f32.xlu1 %v272_v62 }
  0x74   :  { %270 = vadd.xlane.f32.xlu0 %v269_v35 }
  0x77   :  { %279 = vadd.xlane.f32.xlu1 %v278_v3 }
  0x78   :  { %276 = vadd.xlane.f32.xlu0 %v275_v41 }
  0x7b   :  { %285 = vadd.xlane.f32.xlu1 %v284_v6 }
  0x7c   :  { %282 = vadd.xlane.f32.xlu0 %v281_v45 }
  0x7f   :  { %291 = vadd.xlane.f32.xlu1 %v290_v11 }
  0x80   :  { %288 = vadd.xlane.f32.xlu0 %v287_v49 }
  0x90   :  { %v61_v46 = vpop.xlane.xlu1 %60 }
  0x91   :  { %v1495_v12 = vpop.xlane.xlu0 %54 }
  0x94   :  { %v1497_v13 = vpop.xlane.xlu1 %63 }
  0x95   :  { %v1499_v14 = vpop.xlane.xlu0 %57 }
  0x98   :  { %v1501_v19 = vpop.xlane.xlu1 %69 }
  0x99   :  { %v67_v53 = vpop.xlane.xlu0 %66 }
  0x9c   :  { %v1503_v5 = vpop.xlane.xlu1 %75 }
  0x9d   :  { %v73_v50 = vpop.xlane.xlu0 %72 }
  0xa0   :  { %v82_v1 = vpop.xlane.xlu1 %81 }
  0xa1   :  { %v79_v20 = vpop.xlane.xlu0 %78 }
  0xa4   :  { %v1505_v25 = vpop.xlane.xlu1 %87 }
  0xa5   :  { %v1507_v2 = vpop.xlane.xlu0 %84 }
  0xa8   :  { %v94_v0 = vpop.xlane.xlu1 %93 }
  0xa9   :  { %v91_v26 = vpop.xlane.xlu0 %90 }
  0xac   :  { %v100_v31 = vpop.xlane.xlu1 %99 }
  0xad   :  { %v97_v8 = vpop.xlane.xlu0 %96 }
  0xb0   :  { %v106_v9 = vpop.xlane.xlu1 %105 }
  0xb1   :  { %v103_v32 = vpop.xlane.xlu0 %102 }
  0xb4   :  { %v112_v37 = vpop.xlane.xlu1 %111 }
  0xb5   :  { %v109_v15 = vpop.xlane.xlu0 %108 }
  0xb6   :  { %v1509_v16 = vadd.f32 %v109_v15, %v61_v46 }
  0xb8   :  { %v118_v38 = vpop.xlane.xlu1 %117 }
  0xb9   :  { %v115_v43 = vpop.xlane.xlu0 %114 }
  0xba   :  { %v1511_v21 = vadd.f32 %v115_v43, %v67_v53  ;;  %v149_v43 = vadd.f32 %v103_v32, %v1495_v12 }
  0xbc   :  { %v1513_v22 = vpop.xlane.xlu1 %123 }
  0xbd   :  { %v121_v44 = vpop.xlane.xlu0 %120  ;;  %v156_v12 = vadd.f32 %v1513_v22, %v1503_v5 }
  0xbe   :  { %v1515_v47 = vadd.f32 %v121_v44, %v73_v50 }
  0xc0   :  { %v130_v27 = vpop.xlane.xlu1 %129 }
  0xc1   :  { %v127_v28 = vpop.xlane.xlu0 %126  ;;  %v1517_v48 = vadd.f32 %v130_v27, %v82_v1 }
  0xc2   :  { %v1519_v51 = vadd.f32 %v127_v28, %v79_v20  ;;  %v152_v28 = vadd.f32 %v112_v37, %v1497_v13 }
  0xc4   :  { %v1521_v33 = vpop.xlane.xlu1 %135  ;;  %v1587_v37 = vmul.f32 0.0625, %v152_v28 }
  0xc5   :  { %v1523_v34 = vpop.xlane.xlu0 %132 }
  0xc8   :  { %v142_v52 = vpop.xlane.xlu1 %141 }
  0xc9   :  { %v139_v54 = vpop.xlane.xlu0 %138  ;;  %v1525_v39 = vadd.f32 %v142_v52, %v94_v0 }
  0xca   :  { %v1527_v40 = vadd.f32 %v139_v54, %v91_v26  ;;  %v154_v54 = vadd.f32 %v118_v38, %v1501_v19  ;;  %v1590_v19 = vmul.f32 0.0625, %v1509_v16  ;;  %v1601_v16 = vmul.f32 0.0625, %v1511_v21 }
  0xcb   :  { %v1614_v21 = vmul.f32 0.0625, %v1515_v47 }
  0xcc   :  { %v148_v55 = vpop.xlane.xlu1 %147 }
  0xcd   :  { %v145_v56 = vpop.xlane.xlu0 %144  ;;  %v1529_v17 = vadd.f32 %v148_v55, %v100_v31  ;;  %v150_v31 = vadd.f32 %v106_v9, %v1499_v14 }
  0xce   :  { %v1531_v10 = vadd.f32 %v145_v56, %v97_v8 }
  0xd0   :  { %v186_v57 = vpop.xlane.xlu1 %185 }
  0xd1   :  { %v183_v58 = vpop.xlane.xlu0 %182 }
  0xd4   :  { %v1533_v23 = vpop.xlane.xlu1 %191 }
  0xd5   :  { %v1535_v18 = vpop.xlane.xlu0 %188 }
  0xd8   :  { %v1537_v59 = vpop.xlane.xlu1 %197 }
  0xd9   :  { %v1539_v60 = vpop.xlane.xlu0 %194 }
  0xdb   :  { %v979_v61 = vpop.f32.mrb[0].mxu1 }
  0xdc   :  { %v1541_v29 = vpop.xlane.xlu1 %203  ;;  %v521_v62 = vpop.f32.mrb[1].mxu1 }
  0xdd   :  { %v1543_v24 = vpop.xlane.xlu0 %200  ;;  %v1005_v35 = vpop.f32.mrb[0].mxu0 }
  0xde   :  { %v1549_v3 = vadd.f32 %v1005_v35, %v979_v61  ;;  %v714_v41 = vpop.f32.mrb[1].mxu0  ;;  %v1581_v35 = vmul.f32 0.0625, %v149_v43  ;;  %v344_v43 = vmul.f32 %v1587_v37, %v1587_v37 }
  0xdf   :  { %v982_v36 = vpop.f32.mrb[2].mxu1  ;;  %v1551_v4 = vadd.f32 %v714_v41, %v521_v62  ;;  %v1579_v62 = vmul.f32 0.0625, %v150_v31  ;;  %v1592_v41 = vmul.f32 0.0625, %v154_v54  ;;  %v1603_v31 = vmul.f32 0.0625, %v156_v12 }
  0xe0   :  { %v1545_v30 = vpop.xlane.xlu1 %209  ;;  %v531_v6 = vpop.f32.mrb[3].mxu1  ;;  %v1617_v54 = vmul.f32 0.0625, %v1517_v48  ;;  %v160_v48 = vadd.f32 %v1521_v33, %v1505_v25  ;;  %v159_v25 = vadd.f32 %v1523_v34, %v1507_v2 }
  0xe1   :  { %v1547_v63 = vpop.xlane.xlu0 %206  ;;  %v1008_v45 = vpop.f32.mrb[2].mxu0  ;;  %v1627_v47 = vmul.f32 %v1603_v31, %v1603_v31 }
  0xe2   :  { %v1557_v11 = vadd.f32 %v1008_v45, %v982_v36  ;;  %v724_v49 = vpop.f32.mrb[3].mxu0  ;;  %1861 = vst [vmem:[#allocation4_spill] sm:$0xff] %v1617_v54 }
  0xe3   :  { %v985_v46 = vpop.f32.mrb[4].mxu1  ;;  %v1559_v53 = vadd.f32 %v724_v49, %v531_v6  ;;  %v342_v49 = vmul.f32 %v1579_v62, %v1579_v62 }
  0xe4   :  { %v1553_v42 = vpop.xlane.xlu1 %215  ;;  %v541_v50 = vpop.f32.mrb[5].mxu1 }
  0xe5   :  { %v1555_v7 = vpop.xlane.xlu0 %212  ;;  %v1011_v1 = vpop.f32.mrb[4].mxu0 }
  0xe6   :  { %v1565_v26 = vadd.f32 %v1011_v1, %v985_v46  ;;  %v734_v8 = vpop.f32.mrb[5].mxu0  ;;  %v341_v1 = vmul.f32 %v1581_v35, %v1581_v35 }
  0xe7   :  { %v988_v15 = vpop.f32.mrb[6].mxu1  ;;  %v1569_v44 = vadd.f32 %v734_v8, %v541_v50 }
  0xe8   :  { %v1561_v20 = vpop.xlane.xlu1 %221  ;;  %v551_v27 = vpop.f32.mrb[7].mxu1 }
  0xe9   :  { %v1563_v0 = vpop.xlane.xlu0 %218  ;;  %v1014_v52 = vpop.f32.mrb[6].mxu0 }
  0xea   :  { %v1577_v61 = vadd.f32 %v1014_v52, %v988_v15  ;;  %v744_v14 = vpop.f32.mrb[7].mxu0  ;;  %v346_v52 = vmul.f32 %v1592_v41, %v1592_v41 }
  0xeb   :  { %v991_v9 = vpop.f32.mrb[8].mxu1  ;;  %v1585_v32 = vadd.f32 %v744_v14, %v551_v27 }
  0xec   :  { %v1573_v55 = vpop.xlane.xlu1 %227  ;;  %v561_v13 = vpop.f32.mrb[9].mxu1 }
  0xed   :  { %v1575_v56 = vpop.xlane.xlu0 %224  ;;  %v1017_v38 = vpop.f32.mrb[8].mxu0 }
  0xee   :  { %v1594_v45 = vadd.f32 %v1017_v38, %v991_v9  ;;  %v754_v22 = vpop.f32.mrb[9].mxu0 }
  0xef   :  { %v994_v50 = vpop.f32.mrb[10].mxu1  ;;  %v1605_v8 = vadd.f32 %v754_v22, %v561_v13  ;;  %v345_v22 = vmul.f32 %v1601_v16, %v1601_v16 }
  0xf0   :  { %v250_v36 = vpop.xlane.xlu1 %249  ;;  %1859 = vst [vmem:[#allocation2_spill] sm:$0xff] %v1594_v45  ;;  %v571_v15 = vpop.f32.mrb[11].mxu1 }
  0xf1   :  { %v247_v6 = vpop.xlane.xlu0 %246  ;;  %v294_v46 = vadd.f32 %v250_v36, %v186_v57  ;;  %1860 = vst [vmem:[#allocation3_spill] sm:$0xff] %v1605_v8  ;;  %v343_v57 = vmul.f32 %v1590_v19, %v1590_v19  ;;  %v1020_v28 = vpop.f32.mrb[10].mxu0 }
  0xf2   :  { %v293_v5 = vadd.f32 %v247_v6, %v183_v58  ;;  %v1619_v12 = vadd.f32 %v1020_v28, %v994_v50  ;;  %v1637_v28 = vmul.f32 %v1617_v54, %v1617_v54 }
  0xf3   :  { %v326_v58 = vmul.f32 0.0625, %v294_v46  ;;  %v764_v46 = vpop.f32.mrb[11].mxu0 }
  0xf4   :  { %v325_v27 = vmul.f32 0.0625, %v293_v5  ;;  %v256_v14 = vpop.xlane.xlu1 %255  ;;  %1862 = vst [vmem:[#allocation5_spill] sm:$0xff] %v1619_v12  ;;  %v997_v5 = vpop.f32.mrb[12].mxu1  ;;  %v1631_v50 = vadd.f32 %v764_v46, %v571_v15  ;;  %v1645_v46 = vmul.f32 0.0625, %v160_v48 }
  0xf5   :  { %v253_v9 = vpop.xlane.xlu0 %252  ;;  %v358_v13 = vsub.f32 %v326_v58, %v342_v49  ;;  %v296_v36 = vadd.f32 %v256_v14, %v1533_v23  ;;  %v581_v49 = vpop.f32.mrb[13].mxu1  ;;  %v1640_v14 = vmul.f32 0.0625, %v1519_v51 }
  0xf6   :  { %v357_v38 = vsub.f32 %v325_v27, %v341_v1  ;;  %v295_v6 = vadd.f32 %v253_v9, %v1535_v18  ;;  %1863 = vst [vmem:[#allocation6_spill] sm:$0xff] %v1631_v50  ;;  %v347_v18 = vmul.f32 %v1614_v21, %v1614_v21 }
  0xf7   :  { %v374_v1 = vadd.f32 1e-05, %v358_v13  ;;  %v328_v23 = vmul.f32 0.0625, %v296_v36  ;;  %v1023_v36 = vpop.f32.mrb[12].mxu0 }
  0xf8   :  { %v373_v58 = vadd.f32 1e-05, %v357_v38  ;;  %v327_v27 = vmul.f32 0.0625, %v295_v6  ;;  %v262_v33 = vpop.xlane.xlu1 %261  ;;  %v1000_v6 = vpop.f32.mrb[14].mxu1  ;;  %v1648_v12 = vadd.f32 %v1023_v36, %v997_v5 }
  0xf9   :  { %v259_v15 = vpop.xlane.xlu0 %258  ;;  %1043 = vrsqrt.f32 %v374_v1  ;;  %v360_v9 = vsub.f32 %v328_v23, %v344_v43  ;;  %v298_v38 = vadd.f32 %v262_v33, %v1537_v59  ;;  %v774_v51 = vpop.f32.mrb[13].mxu0  ;;  %v1655_v59 = vmul.f32 0.0625, %v1525_v39 }
  0xfa   :  { %v359_v13 = vsub.f32 %v327_v27, %v343_v57  ;;  %1045 = vrsqrt.f32 %v373_v58  ;;  %v297_v50 = vadd.f32 %v259_v15, %v1539_v60  ;;  %v591_v8 = vpop.f32.mrb[15].mxu1  ;;  %v1650_v45 = vadd.f32 %v774_v51, %v581_v49  ;;  %v1026_v43 = vpop.f32.mrb[14].mxu0 }
  0xfb   :  { %v376_v54 = vadd.f32 1e-05, %v360_v9  ;;  %v330_v34 = vmul.f32 0.0625, %v298_v38  ;;  %v1652_v57 = vmul.f32 0.0625, %v159_v25  ;;  %v1657_v23 = vadd.f32 %v1026_v43, %v1000_v6  ;;  %v784_v33 = vpop.f32.mrb[15].mxu0 }
  0xfc   :  { %v375_v2 = vadd.f32 1e-05, %v359_v13  ;;  %v329_v48 = vmul.f32 0.0625, %v297_v50  ;;  %v268_v1 = vpop.xlane.xlu1 %267  ;;  %v1662_v49 = vmul.f32 0.0625, %v1527_v40  ;;  %v1664_v15 = vadd.f32 %v784_v33, %v591_v8 }
  0xfd   :  { %v265_v58 = vpop.xlane.xlu0 %264  ;;  %1047 = vrsqrt.f32 %v376_v54  ;;  %v362_v60 = vsub.f32 %v330_v34, %v346_v52  ;;  %v300_v5 = vadd.f32 %v268_v1, %v1541_v29  ;;  %v349_v39 = vmul.f32 %v1640_v14, %v1640_v14 }
  0xfe   :  { %v299_v27 = vadd.f32 %v265_v58, %v1543_v24  ;;  %1049 = vrsqrt.f32 %v375_v2  ;;  %v361_v25 = vsub.f32 %v329_v48, %v345_v22  ;;  %v1670_v52 = vmul.f32 %v1645_v46, %v1645_v46 }
  0xff   :  { %v378_v50 = vadd.f32 1e-05, %v362_v60  ;;  %v332_v9 = vmul.f32 0.0625, %v300_v5  ;;  %v1674_v29 = vmul.f32 %v1652_v57, %v1652_v57  ;;  %v1677_v40 = vmul.f32 0.0625, %v1529_v17  ;;  %v1692_v17 = vld [vmem:[%s1855_s3] ss:$0 sm:$0xff] }
 0x100   :  { %v331_v13 = vmul.f32 0.0625, %v299_v27  ;;  %v377_v24 = vadd.f32 1e-05, %v361_v25  ;;  %v274_v8 = vpop.xlane.xlu1 %273  ;;  %v1683_v6 = vmul.f32 %v1655_v59, %v1655_v59  ;;  %v1687_v51 = vmul.f32 %v1662_v49, %v1662_v49 }
 0x101   :  { %v271_v54 = vpop.xlane.xlu0 %270  ;;  %1051 = vrsqrt.f32 %v378_v50  ;;  %v364_v22 = vsub.f32 %v332_v9, %v1627_v47  ;;  %v302_v36 = vadd.f32 %v274_v8, %v1545_v30  ;;  %v1700_v1 = vmul.f32 %v1677_v40, %v1677_v40 }
 0x102   :  { %v363_v38 = vsub.f32 %v331_v13, %v347_v18  ;;  %1053 = vrsqrt.f32 %v377_v24  ;;  %v301_v2 = vadd.f32 %v271_v54, %v1547_v63  ;;  %v1696_v18 = vmul.f32 0.0625, %v1531_v10 }
 0x103   :  { %v1044_v47 = vpop.eup %1043  ;;  %v380_v30 = vadd.f32 1e-05, %v364_v22  ;;  %v334_v43 = vmul.f32 0.0625, %v302_v36 }
 0x104   :  { %v379_v34 = vadd.f32 1e-05, %v363_v38  ;;  %v1046_v48 = vpop.eup %1045  ;;  %v794_v58 = vmul.f32 %v1044_v47, %v1549_v3  ;;  %v810_v60 = vmul.f32 %v1044_v47, %v1579_v62  ;;  %v333_v5 = vmul.f32 0.0625, %v301_v2  ;;  %v280_v27 = vpop.xlane.xlu1 %279 }
 0x105   :  { %v277_v33 = vpop.xlane.xlu0 %276  ;;  %1055 = vrsqrt.f32 %v380_v30  ;;  %v366_v63 = vsub.f32 %v334_v43, %v1637_v28  ;;  %v793_v10 = vmul.f32 %v1046_v48, %v1551_v4  ;;  %v809_v25 = vmul.f32 %v1046_v48, %v1581_v35  ;;  %v1716_v28 = vld [vmem:[%s1856_s4] ss:$0 sm:$0xff] }
 0x106   :  { %1057 = vrsqrt.f32 %v379_v34  ;;  %v833_v50 = vmul.f32 %v1692_v17, %v810_v60  ;;  %v365_v9 = vsub.f32 %v333_v5, %v349_v39  ;;  %v304_v13 = vadd.f32 %v280_v27, %v1553_v42 }
 0x107   :  { %v1048_v24 = vpop.eup %1047  ;;  %v1711_v3 = vmul.f32 %v1696_v18, %v1696_v18  ;;  %v382_v62 = vadd.f32 1e-05, %v366_v63  ;;  %v832_v4 = vmul.f32 %v1692_v17, %v809_v25  ;;  %v303_v35 = vadd.f32 %v277_v33, %v1555_v7 }
 0x108   :  { %v1050_v8 = vpop.eup %1049  ;;  %v849_v54 = vsub.f32 %v794_v58, %v833_v50  ;;  %v381_v39 = vadd.f32 1e-05, %v365_v9  ;;  %v336_v22 = vmul.f32 0.0625, %v304_v13  ;;  %v796_v42 = vmul.f32 %v1048_v24, %v1557_v11  ;;  %v286_v38 = vpop.xlane.xlu1 %285 }
 0x109   :  { %1059 = vrsqrt.f32 %v382_v62  ;;  %v848_v36 = vsub.f32 %v793_v10, %v832_v4  ;;  %v812_v2 = vmul.f32 %v1048_v24, %v1587_v37  ;;  %v335_v47 = vmul.f32 0.0625, %v303_v35  ;;  %v283_v7 = vpop.xlane.xlu0 %282 }
 0x10a   :  { %v872_v30 = vadd.f32 %v1716_v28, %v849_v54  ;;  %1061 = vrsqrt.f32 %v381_v39  ;;  %v368_v34 = vsub.f32 %v336_v22, %v1670_v52  ;;  %v795_v43 = vmul.f32 %v1050_v8, %v1559_v53 }
 0x10b   :  { %v1052_v48 = vpop.eup %1051  ;;  %v871_v58 = vadd.f32 %v1716_v28, %v848_v36  ;;  %v835_v60 = vmul.f32 %v1692_v17, %v812_v2  ;;  %v367_v11 = vsub.f32 %v335_v47, %v1674_v29  ;;  %v811_v5 = vmul.f32 %v1050_v8, %v1590_v19 }
 0x10c   :  { %v1054_v27 = vpop.eup %1053  ;;  %888 = vst.msk [vmem:[%s1857_s5 + $0x8] sm:$0xff] %vm52_vm0, %v872_v30  ;;  %v384_v37 = vadd.f32 1e-05, %v368_v34  ;;  %v306_v52 = vadd.f32 %v286_v38, %v1561_v20  ;;  %v798_v53 = vmul.f32 %v1052_v48, %v1565_v26  ;;  %v814_v33 = vmul.f32 %v1052_v48, %v1592_v41  ;;  %v292_v25 = vpop.xlane.xlu1 %291 }
 0x10d   :  { %887 = vst.msk [vmem:[%s1857_s5] sm:$0xff] %vm52_vm0, %v871_v58  ;;  %v851_v29 = vsub.f32 %v796_v42, %v835_v60  ;;  %v383_v19 = vadd.f32 1e-05, %v367_v11  ;;  %v834_v63 = vmul.f32 %v1692_v17, %v811_v5  ;;  %v305_v10 = vadd.f32 %v283_v7, %v1563_v0  ;;  %v289_v54 = vpop.xlane.xlu0 %288  ;;  %v1864_v58 = vld [vmem:[#allocation2_spill] sm:$0xff]  ;;  %v1865_v5 = vld [vmem:[#allocation4_spill] sm:$0xff] }
 0x10e   :  { %1063 = vrsqrt.f32 %v384_v37  ;;  %v338_v50 = vmul.f32 0.0625, %v306_v52  ;;  %v837_v20 = vmul.f32 %v1692_v17, %v814_v33  ;;  %v797_v26 = vmul.f32 %v1054_v27, %v1569_v44 }
 0x10f   :  { %v1056_v9 = vpop.eup %1055  ;;  %v874_v41 = vadd.f32 %v1716_v28, %v851_v29  ;;  %1065 = vrsqrt.f32 %v383_v19  ;;  %v850_v13 = vsub.f32 %v795_v43, %v834_v63  ;;  %v337_v24 = vmul.f32 0.0625, %v305_v10 }
 0x110   :  { %v1058_v62 = vpop.eup %1057  ;;  %v370_v4 = vsub.f32 %v338_v50, %v1683_v6  ;;  %v853_v35 = vsub.f32 %v798_v53, %v837_v20  ;;  %v813_v8 = vmul.f32 %v1054_v27, %v1601_v16  ;;  %v308_v0 = vadd.f32 %v292_v25, %v1573_v55  ;;  %v1866_v53 = vld [vmem:[#allocation3_spill] sm:$0xff] }
 0x111   :  { %890 = vst.msk [vmem:[%s1857_s5 + $0x18] sm:$0xff] %vm52_vm0, %v874_v41  ;;  %v873_v44 = vadd.f32 %v1716_v28, %v850_v13  ;;  %v369_v39 = vsub.f32 %v337_v24, %v1687_v51  ;;  %v800_v22 = vmul.f32 %v1056_v9, %v1577_v61  ;;  %v816_v42 = vmul.f32 %v1056_v9, %v1603_v31  ;;  %v1868_v9 = vld [vmem:[#allocation6_spill] sm:$0xff] }
 0x112   :  { %v386_v6 = vadd.f32 1e-05, %v370_v4  ;;  %v876_v38 = vadd.f32 %v1716_v28, %v853_v35  ;;  %v836_v16 = vmul.f32 %v1692_v17, %v813_v8  ;;  %v340_v55 = vmul.f32 0.0625, %v308_v0 }
 0x113   :  { %v1060_v36 = vpop.eup %1059  ;;  %889 = vst.msk [vmem:[%s1857_s5 + $0x10] sm:$0xff] %vm52_vm0, %v873_v44  ;;  %v385_v2 = vadd.f32 1e-05, %v369_v39  ;;  %v839_v47 = vmul.f32 %v1692_v17, %v816_v42  ;;  %v307_v51 = vadd.f32 %v289_v54, %v1575_v56  ;;  %v799_v61 = vmul.f32 %v1058_v62, %v1585_v32 }
 0x114   :  { %v1062_v31 = vpop.eup %1061  ;;  %1067 = vrsqrt.f32 %v386_v6  ;;  %892 = vst.msk [vmem:[%s1857_s5 + $0x28] sm:$0xff] %vm52_vm0, %v876_v38  ;;  %v852_v30 = vsub.f32 %v797_v26, %v836_v16  ;;  %v372_v34 = vsub.f32 %v340_v55, %v1700_v1  ;;  %v815_v43 = vmul.f32 %v1058_v62, %v1614_v21 }
 0x115   :  { %1069 = vrsqrt.f32 %v385_v2  ;;  %v855_v7 = vsub.f32 %v800_v22, %v839_v47  ;;  %v339_v48 = vmul.f32 0.0625, %v307_v51  ;;  %v802_v60 = vmul.f32 %v1060_v36, %v1864_v58 }
 0x116   :  { %v875_v56 = vadd.f32 %v1716_v28, %v852_v30  ;;  %v388_v32 = vadd.f32 1e-05, %v372_v34  ;;  %v838_v11 = vmul.f32 %v1692_v17, %v815_v43  ;;  %v818_v27 = vmul.f32 %v1060_v36, %v1865_v5 }
 0x117   :  { %v878_v37 = vadd.f32 %v1716_v28, %v855_v7  ;;  %v371_v52 = vsub.f32 %v339_v48, %v1711_v3  ;;  %v801_v1 = vmul.f32 %v1062_v31, %v1866_v53  ;;  %v817_v21 = vmul.f32 %v1062_v31, %v1640_v14  ;;  %v1867_v14 = vld [vmem:[#allocation5_spill] sm:$0xff] }
 0x118   :  { %v1064_v33 = vpop.eup %1063  ;;  %891 = vst.msk [vmem:[%s1857_s5 + $0x20] sm:$0xff] %vm52_vm0, %v875_v56  ;;  %1071 = vrsqrt.f32 %v388_v32  ;;  %v854_v29 = vsub.f32 %v799_v61, %v838_v11  ;;  %v841_v19 = vmul.f32 %v1692_v17, %v818_v27 }
 0x119   :  { %v1066_v63 = vpop.eup %1065  ;;  %894 = vst.msk [vmem:[%s1857_s5 + $0x38] sm:$0xff] %vm52_vm0, %v878_v37  ;;  %v387_v3 = vadd.f32 1e-05, %v371_v52  ;;  %v840_v10 = vmul.f32 %v1692_v17, %v817_v21  ;;  %v804_v25 = vmul.f32 %v1064_v33, %v1867_v14  ;;  %v820_v50 = vmul.f32 %v1064_v33, %v1645_v46 }
 0x11a   :  { %v877_v20 = vadd.f32 %v1716_v28, %v854_v29  ;;  %v857_v26 = vsub.f32 %v802_v60, %v841_v19  ;;  %v803_v41 = vmul.f32 %v1066_v63, %v1868_v9  ;;  %v819_v13 = vmul.f32 %v1066_v63, %v1652_v57 }
 0x11b   :  { %1073 = vrsqrt.f32 %v387_v3  ;;  %v856_v24 = vsub.f32 %v801_v1, %v840_v10  ;;  %v843_v62 = vmul.f32 %v1692_v17, %v820_v50 }
 0x11c   :  { %893 = vst.msk [vmem:[%s1857_s5 + $0x30] sm:$0xff] %vm52_vm0, %v877_v20  ;;  %v880_v4 = vadd.f32 %v1716_v28, %v857_v26  ;;  %v842_v46 = vmul.f32 %v1692_v17, %v819_v13 }
 0x11d   :  { %v879_v35 = vadd.f32 %v1716_v28, %v856_v24  ;;  %v859_v8 = vsub.f32 %v804_v25, %v843_v62 }
 0x11e   :  { %v1068_v0 = vpop.eup %1067  ;;  %896 = vst.msk [vmem:[%s1857_s5 + $0x48] sm:$0xff] %vm52_vm0, %v880_v4  ;;  %v858_v57 = vsub.f32 %v803_v41, %v842_v46 }
 0x11f   :  { %v1070_v54 = vpop.eup %1069  ;;  %895 = vst.msk [vmem:[%s1857_s5 + $0x40] sm:$0xff] %vm52_vm0, %v879_v35  ;;  %v882_v44 = vadd.f32 %v1716_v28, %v859_v8  ;;  %v806_v39 = vmul.f32 %v1068_v0, %v1648_v12  ;;  %v822_v22 = vmul.f32 %v1068_v0, %v1655_v59 }
 0x120   :  { %v881_v42 = vadd.f32 %v1716_v28, %v858_v57  ;;  %v805_v6 = vmul.f32 %v1070_v54, %v1650_v45  ;;  %v821_v38 = vmul.f32 %v1070_v54, %v1662_v49 }
 0x121   :  { %898 = vst.msk [vmem:[%s1857_s5 + $0x58] sm:$0xff] %vm52_vm0, %v882_v44  ;;  %v845_v16 = vmul.f32 %v1692_v17, %v822_v22 }
 0x122   :  { %v1072_v55 = vpop.eup %1071  ;;  %897 = vst.msk [vmem:[%s1857_s5 + $0x50] sm:$0xff] %vm52_vm0, %v881_v42  ;;  %v844_v12 = vmul.f32 %v1692_v17, %v821_v38 }
 0x123   :  { %v861_v59 = vsub.f32 %v806_v39, %v845_v16  ;;  %v808_v45 = vmul.f32 %v1072_v55, %v1657_v23  ;;  %v824_v49 = vmul.f32 %v1072_v55, %v1677_v40 }
 0x124   :  { %v860_v36 = vsub.f32 %v805_v6, %v844_v12 }
 0x125   :  { %v1074_v2 = vpop.eup %1073  ;;  %v884_v47 = vadd.f32 %v1716_v28, %v861_v59  ;;  %v847_v51 = vmul.f32 %v1692_v17, %v824_v49 }
 0x126   :  { %v883_v61 = vadd.f32 %v1716_v28, %v860_v36  ;;  %v807_v31 = vmul.f32 %v1074_v2, %v1664_v15  ;;  %v823_v30 = vmul.f32 %v1074_v2, %v1696_v18 }
 0x127   :  { %900 = vst.msk [vmem:[%s1857_s5 + $0x68] sm:$0xff] %vm52_vm0, %v884_v47  ;;  %v863_v23 = vsub.f32 %v808_v45, %v847_v51 }
 0x128   :  { %899 = vst.msk [vmem:[%s1857_s5 + $0x60] sm:$0xff] %vm52_vm0, %v883_v61  ;;  %v846_v40 = vmul.f32 %v1692_v17, %v823_v30 }
 0x129   :  { %v886_v34 = vadd.f32 %v1716_v28, %v863_v23 }
 0x12a   :  { %v862_v43 = vsub.f32 %v807_v31, %v846_v40 }
 0x12b   :  { %902 = vst.msk [vmem:[%s1857_s5 + $0x78] sm:$0xff] %vm52_vm0, %v886_v34 }
 0x12c   :  { %v885_v15 = vadd.f32 %v1716_v28, %v862_v43 }
 0x12e   :  { %901 = vst.msk [vmem:[%s1857_s5 + $0x70] sm:$0xff] %vm52_vm0, %v885_v15 }

</bundles_post_ra>
